<compile_context>
chip_gen: v7x
topology: tpu7x:2x2x1
jax: 0.10.0
libtpu: 0.0.40
codegen_flags: <defaults>
</compile_context>

<pallas_src>
import functools
import math

import jax
import jax.numpy as jnp
from jax import lax
from jax.experimental import pallas as pl
from jax.experimental.pallas import tpu as pltpu

# ---------------- small config consistent with InternLM2DecoderLayer --------
HIDDEN = 32
N_HEADS = 4
N_KV_HEADS = 2
HEAD_DIM = HIDDEN // N_HEADS            # 8
N_GROUPS = N_HEADS // N_KV_HEADS        # 2
INTERMEDIATE = 64
ROPE_THETA = 10000.0
RMS_EPS = 1e-6
BATCH = 2
SEQ = 8
DTYPE = jnp.float32
WEIGHT_DTYPE = jnp.bfloat16             # MXU-native operand dtype

# fused Wqkv column layout: [ q | k | v | q_rot | k_rot ]
QW = N_HEADS * HEAD_DIM                 # 32
KW = N_KV_HEADS * HEAD_DIM              # 16
QKW = QW + KW                           # 48
VW = KW                                 # 16
ROT_OFF = QKW + VW                      # 64
WQKV_COLS = ROT_OFF + QKW               # 112


# ------------------------------ fused kernel --------------------------------
def _decoder_layer_kernel(x_ref, mask_ref, cos_ref, sin_ref, an_ref, fn_ref,
                          wqkv_ref, wo_ref, w13_ref, w2_ref, o_ref, ctx_ref, *,
                          eps, seq, n_heads, n_kv_heads, head_dim, inter):
    f32 = jnp.float32
    bf16 = jnp.bfloat16
    d = head_dim
    ng = n_heads // n_kv_heads
    qw = n_heads * d
    kw = n_kv_heads * d
    qkw = qw + kw
    rot_off = qkw + kw

    x = x_ref[...].astype(f32)                                   # (S, H)

    # ---- attention RMSNorm (fp32 stats) ----
    var = jnp.mean(x * x, axis=-1, keepdims=True)
    h = x * lax.rsqrt(var + eps) * an_ref[...].astype(f32)

    # ---- fused QKV(+rot) projection; bf16 operands, f32 accumulate ----
    # q columns already carry the 1/sqrt(head_dim) softmax scale.
    qkv = jnp.dot(h.astype(bf16), wqkv_ref[...], preferred_element_type=f32)

    # ---- RoPE: rotate_half folded into the *_rot weight columns ----
    qk = qkv[:, :qkw] * cos_ref[...] + qkv[:, rot_off:rot_off + qkw] * sin_ref[...]
    vv = qkv[:, qkw:qkw + kw]                                    # (S, kw)

    mask = mask_ref[...]                                         # (ng*S, S)

    # ---- attention: one score + one PV matmul per kv head (GQA group) ----
    for kvh in range(n_kv_heads):
        c0 = kvh * ng * d
        # stack the group's query heads along rows -> (ng*S, D)
        q_grp = jnp.concatenate(
            [qk[:, c0 + g * d:c0 + (g + 1) * d] for g in range(ng)], axis=0)
        k_h = qk[:, qw + kvh * d:qw + (kvh + 1) * d]              # (S, D)
        v_h = vv[:, kvh * d:(kvh + 1) * d]                        # (S, D)

        s = lax.dot_general(q_grp.astype(bf16), k_h.astype(bf16),
                            (((1,), (1,)), ((), ())),
                            preferred_element_type=f32)           # (ng*S, S)
        s = s + mask
        s = s - jnp.max(s, axis=-1, keepdims=True)
        p = jnp.exp(s)
        p = p * pl.reciprocal(jnp.sum(p, axis=-1, keepdims=True), approx=True)
        ctx_grp = jnp.dot(p.astype(bf16), v_h.astype(bf16),
                          preferred_element_type=f32)             # (ng*S, D)

        # scatter the group's heads into the (S, H) ctx slab (static offsets)
        for g in range(ng):
            qh = kvh * ng + g
            ctx_ref[:, qh * d:(qh + 1) * d] = ctx_grp[g * seq:(g + 1) * seq, :]

    # ---- output projection (single dot over the ctx slab) + residual ----
    attn_out = jnp.dot(ctx_ref[...].astype(bf16), wo_ref[...],
                       preferred_element_type=f32)
    h1 = x + attn_out

    # ---- FFN: RMSNorm prologue, fused W1|W3, SwiGLU epilogue, W2, residual --
    var2 = jnp.mean(h1 * h1, axis=-1, keepdims=True)
    hn = h1 * lax.rsqrt(var2 + eps) * fn_ref[...].astype(f32)
    g13 = jnp.dot(hn.astype(bf16), w13_ref[...], preferred_element_type=f32)
    a = g13[:, :inter]
    c = g13[:, inter:]
    down = jnp.dot((a * jax.nn.sigmoid(a) * c).astype(bf16), w2_ref[...],
                   preferred_element_type=f32)
    o_ref[...] = (h1 + down).astype(o_ref.dtype)


# ------------------------------- glue (JAX) ---------------------------------
def rope_cos_sin(seq_len, dim, base=ROPE_THETA):
    inv_freq = 1.0 / (base ** (jnp.arange(0, dim, 2, dtype=jnp.float32) / dim))
    t = jnp.arange(seq_len, dtype=jnp.float32)
    freqs = jnp.einsum("i,j->ij", t, inv_freq)
    emb = jnp.concatenate([freqs, freqs], axis=-1)
    return jnp.cos(emb), jnp.sin(emb)                              # (S, D) f32


def _prep_wqkv(wqkv):
    """One-time wrapper-side re-layout of Wqkv.

    Emits columns [q | k | v | q_rot | k_rot] where q heads are in reference
    order (kv_head * n_groups + group), the rotate_half permutation + sign is
    folded into the *_rot blocks, and the 1/sqrt(head_dim) softmax scale is
    folded into q / q_rot.  Would be done once at weight-load time.
    """
    w = wqkv.astype(jnp.float32)
    d, ng, half = HEAD_DIM, N_GROUPS, HEAD_DIM // 2
    stride = (2 + ng) * d
    scale = 1.0 / math.sqrt(d)

    def rot(cols):                       # rotate_half folded into columns
        return jnp.concatenate([-cols[:, half:], cols[:, :half]], axis=1)

    q_cols = []
    for qh in range(N_HEADS):
        kvh, g = divmod(qh, ng)
        base = kvh * stride + g * d
        q_cols.append(w[:, base:base + d])
    k_cols = [w[:, kvh * stride + ng * d: kvh * stride + (ng + 1) * d]
              for kvh in range(N_KV_HEADS)]
    v_cols = [w[:, kvh * stride + (ng + 1) * d: kvh * stride + (ng + 2) * d]
              for kvh in range(N_KV_HEADS)]

    wq = scale * jnp.concatenate(q_cols, axis=1)
    wk = jnp.concatenate(k_cols, axis=1)
    wv = jnp.concatenate(v_cols, axis=1)
    wq_rot = scale * jnp.concatenate([rot(c) for c in q_cols], axis=1)
    wk_rot = jnp.concatenate([rot(c) for c in k_cols], axis=1)
    big = jnp.concatenate([wq, wk, wv, wq_rot, wk_rot], axis=1)
    assert big.shape == (HIDDEN, WQKV_COLS)
    return big.astype(WEIGHT_DTYPE)


def init_params(key):
    ks = jax.random.split(key, 5)
    scale = 0.02
    qkv_out = (N_HEADS + 2 * N_KV_HEADS) * HEAD_DIM

    def w(k, shape):
        return (scale * jax.random.normal(k, shape, jnp.float32)).astype(WEIGHT_DTYPE)

    return {
        # weights stored as (in_features, out_features), bf16 (MXU-native)
        "wqkv": w(ks[0], (HIDDEN, qkv_out)),
        "wo":   w(ks[1], (HIDDEN, HIDDEN)),
        "w1":   w(ks[2], (HIDDEN, INTERMEDIATE)),
        "w3":   w(ks[3], (HIDDEN, INTERMEDIATE)),
        "w2":   w(ks[4], (INTERMEDIATE, HIDDEN)),
        "attention_norm": jnp.ones((HIDDEN,), jnp.float32),
        "ffn_norm":       jnp.ones((HIDDEN,), jnp.float32),
    }


def decoder_layer(params, hidden_states, attention_mask):
    """hidden_states: (B, S, H); attention_mask: (B, 1, S, S) additive."""
    B, S, H = hidden_states.shape
    M = B * S
    x2d = hidden_states.reshape(M, H)

    # wrapper-side (one-time / few-KB) preparation — no in-kernel relayouts:
    wqkv_big = _prep_wqkv(params["wqkv"])                          # (H, 112) bf16
    w13 = jnp.concatenate([params["w1"], params["w3"]], axis=1)    # (H, 2I) bf16
    cos, sin = rope_cos_sin(S, HEAD_DIM)
    cos_qk = jnp.concatenate(
        [jnp.tile(cos, (1, N_HEADS)), jnp.tile(cos, (1, N_KV_HEADS))], axis=1)
    sin_qk = jnp.concatenate(
        [jnp.tile(sin, (1, N_HEADS)), jnp.tile(sin, (1, N_KV_HEADS))], axis=1)
    mask = attention_mask.reshape(B, S, S).astype(jnp.float32)
    mask_g = jnp.tile(mask, (1, N_GROUPS, 1)).reshape(B * N_GROUPS * S, S)

    kernel = functools.partial(
        _decoder_layer_kernel,
        eps=RMS_EPS, seq=S, n_heads=N_HEADS, n_kv_heads=N_KV_HEADS,
        head_dim=HEAD_DIM, inter=INTERMEDIATE)

    out2d = pl.pallas_call(
        kernel,
        out_shape=jax.ShapeDtypeStruct((M, H), hidden_states.dtype),
        grid=(B,),
        in_specs=[
            pl.BlockSpec((S, H), lambda b: (b, 0)),                   # x rows of batch b
            pl.BlockSpec((N_GROUPS * S, S), lambda b: (b, 0)),        # group-tiled mask
            pl.BlockSpec((S, QKW), lambda b: (0, 0)),                 # cos (q|k width)
            pl.BlockSpec((S, QKW), lambda b: (0, 0)),                 # sin (q|k width)
            pl.BlockSpec((1, H), lambda b: (0, 0)),                   # attn norm w
            pl.BlockSpec((1, H), lambda b: (0, 0)),                   # ffn norm w
            pl.BlockSpec((H, WQKV_COLS), lambda b: (0, 0)),           # Wqkv big (bf16)
            pl.BlockSpec((H, H), lambda b: (0, 0)),                   # Wo (bf16)
            pl.BlockSpec((H, 2 * INTERMEDIATE), lambda b: (0, 0)),    # W1|W3 (bf16)
            pl.BlockSpec((INTERMEDIATE, H), lambda b: (0, 0)),        # W2 (bf16)
        ],
        out_specs=pl.BlockSpec((S, H), lambda b: (b, 0)),
        scratch_shapes=[pltpu.VMEM((S, N_HEADS * HEAD_DIM), jnp.float32)],
        compiler_params=pltpu.CompilerParams(
            dimension_semantics=("parallel",)),
    )(x2d, mask_g, cos_qk, sin_qk,
      params["attention_norm"].reshape(1, H),
      params["ffn_norm"].reshape(1, H),
      wqkv_big, params["wo"], w13, params["w2"])

    return out2d.reshape(B, S, H)


# ------------------------ pure-JAX reference (for check) --------------------
def rotate_half(x):
    x1 = x[..., : x.shape[-1] // 2]
    x2 = x[..., x.shape[-1] // 2:]
    return jnp.concatenate([-x2, x1], axis=-1)


def _ref_rmsnorm(x, w, eps=RMS_EPS):
    xf = x.astype(jnp.float32)
    var = jnp.mean(xf * xf, axis=-1, keepdims=True)
    return (w * (xf * lax.rsqrt(var + eps))).astype(x.dtype)


def ref_decoder_layer(params, hidden_states, attention_mask):
    """fp32 reference using the same (bf16-valued) weights as the kernel."""
    f32 = jnp.float32
    B, S, H = hidden_states.shape
    wqkv = params["wqkv"].astype(f32)
    wo = params["wo"].astype(f32)
    w1 = params["w1"].astype(f32)
    w3 = params["w3"].astype(f32)
    w2 = params["w2"].astype(f32)

    h = _ref_rmsnorm(hidden_states, params["attention_norm"])
    qkv = h @ wqkv
    qkv = qkv.reshape(B, S, N_KV_HEADS, 2 + N_GROUPS, HEAD_DIM)
    q = qkv[..., :N_GROUPS, :].reshape(B, S, N_HEADS, HEAD_DIM).transpose(0, 2, 1, 3)
    k = qkv[..., -2, :].transpose(0, 2, 1, 3)
    v = qkv[..., -1, :].transpose(0, 2, 1, 3)
    cos, sin = rope_cos_sin(S, HEAD_DIM)
    q = q * cos + rotate_half(q) * sin
    k = k * cos + rotate_half(k) * sin
    k = jnp.repeat(k, N_GROUPS, axis=1)
    v = jnp.repeat(v, N_GROUPS, axis=1)
    w = jnp.einsum("bhqd,bhkd->bhqk", q, k) / math.sqrt(HEAD_DIM)
    w = w + attention_mask
    w = jax.nn.softmax(w.astype(f32), axis=-1)
    o = jnp.einsum("bhqk,bhkd->bhqd", w, v)
    o = o.transpose(0, 2, 1, 3).reshape(B, S, H) @ wo
    h1 = hidden_states + o
    hn = _ref_rmsnorm(h1, params["ffn_norm"])
    down = (jax.nn.silu(hn @ w1) * (hn @ w3)) @ w2
    return h1 + down


# --------------------------------- main --------------------------------------
if __name__ == "__main__":
    key = jax.random.PRNGKey(0)
    pkey, xkey = jax.random.split(key)
    params = init_params(pkey)

    hidden_states = jax.random.normal(xkey, (BATCH, SEQ, HIDDEN), DTYPE)

    # causal additive mask (B, 1, S, S): 0 on/below diagonal, -1e9 above.
    causal = jnp.tril(jnp.ones((SEQ, SEQ), dtype=bool))
    attention_mask = jnp.where(causal, 0.0, -1e9).astype(DTYPE)[None, None]
    attention_mask = jnp.broadcast_to(attention_mask, (BATCH, 1, SEQ, SEQ))

    out = jax.block_until_ready(decoder_layer(params, hidden_states, attention_mask))
    ref = ref_decoder_layer(params, hidden_states, attention_mask)

    assert out.shape == (BATCH, SEQ, HIDDEN)
    max_err = float(jnp.max(jnp.abs(out - ref)))
    # kernel uses bf16 MXU operands + approx softmax reciprocal; fp32 elsewhere
    assert jnp.allclose(out, ref, rtol=1e-2, atol=1e-2), \
        f"mismatch vs reference (max abs err {max_err})"

    print("KERNEL_OK")
</pallas_src>

<mosaic_0001>
module attributes {stable_mosaic.version = 11 : i64} {
  func.func @_decoder_layer_kernel(%arg0: i32, %arg1: memref<8x32xf32, #tpu.memory_space<vmem>>, %arg2: memref<16x8xf32, #tpu.memory_space<vmem>>, %arg3: memref<8x48xf32, #tpu.memory_space<vmem>>, %arg4: memref<8x48xf32, #tpu.memory_space<vmem>>, %arg5: memref<1x32xf32, #tpu.memory_space<vmem>>, %arg6: memref<1x32xf32, #tpu.memory_space<vmem>>, %arg7: memref<32x112xbf16, #tpu.memory_space<vmem>>, %arg8: memref<32x32xbf16, #tpu.memory_space<vmem>>, %arg9: memref<32x128xbf16, #tpu.memory_space<vmem>>, %arg10: memref<64x32xbf16, #tpu.memory_space<vmem>>, %arg11: memref<8x32xf32, #tpu.memory_space<vmem>>, %arg12: memref<8x32xf32, #tpu.memory_space<vmem>>) attributes {dimension_semantics = [#tpu.dimension_semantics<parallel>], iteration_bounds = array<i64: 2>, scalar_prefetch = 0 : i64, scratch_operands = 1 : i64, tpu.core_type = #tpu.core_type<tc>, window_params = [{transform_indices = @transform_0, window_bounds = array<i64: 8, 32>}, {transform_indices = @transform_1, window_bounds = array<i64: 16, 8>}, {pipeline_mode = #tpu.pipeline_mode<synchronous>, transform_indices = @transform_2, window_bounds = array<i64: 8, 48>}, {pipeline_mode = #tpu.pipeline_mode<synchronous>, transform_indices = @transform_3, window_bounds = array<i64: 8, 48>}, {pipeline_mode = #tpu.pipeline_mode<synchronous>, transform_indices = @transform_4, window_bounds = array<i64: 1, 32>}, {pipeline_mode = #tpu.pipeline_mode<synchronous>, transform_indices = @transform_5, window_bounds = array<i64: 1, 32>}, {pipeline_mode = #tpu.pipeline_mode<synchronous>, transform_indices = @transform_6, window_bounds = array<i64: 32, 112>}, {pipeline_mode = #tpu.pipeline_mode<synchronous>, transform_indices = @transform_7, window_bounds = array<i64: 32, 32>}, {pipeline_mode = #tpu.pipeline_mode<synchronous>, transform_indices = @transform_8, window_bounds = array<i64: 32, 128>}, {pipeline_mode = #tpu.pipeline_mode<synchronous>, transform_indices = @transform_9, window_bounds = array<i64: 64, 32>}, {transform_indices = @transform_10, window_bounds = array<i64: 8, 32>}]} {
    %c0 = arith.constant 0 : index
    %c0_0 = arith.constant 0 : index
    %0 = vector.load %arg1[%c0, %c0_0] : memref<8x32xf32, #tpu.memory_space<vmem>>, vector<8x32xf32>
    %1 = arith.mulf %0, %0 : vector<8x32xf32>
    %cst = arith.constant dense<0.000000e+00> : vector<8xf32>
    %2 = vector.multi_reduction <add>, %1, %cst [1] : vector<8x32xf32> to vector<8xf32>
    %3 = vector.shape_cast %2 : vector<8xf32> to vector<8x1xf32>
    %cst_1 = arith.constant 3.200000e+01 : f32
    %4 = vector.broadcast %cst_1 : f32 to vector<8x1xf32>
    %5 = arith.divf %3, %4 : vector<8x1xf32>
    %cst_2 = arith.constant 9.99999997E-7 : f32
    %6 = vector.broadcast %cst_2 : f32 to vector<8x1xf32>
    %7 = arith.addf %5, %6 : vector<8x1xf32>
    %8 = math.rsqrt %7 : vector<8x1xf32>
    %9 = vector.broadcast %8 : vector<8x1xf32> to vector<8x32xf32>
    %10 = arith.mulf %0, %9 : vector<8x32xf32>
    %c0_3 = arith.constant 0 : index
    %c0_4 = arith.constant 0 : index
    %11 = vector.load %arg5[%c0_3, %c0_4] : memref<1x32xf32, #tpu.memory_space<vmem>>, vector<1x32xf32>
    %12 = vector.broadcast %11 : vector<1x32xf32> to vector<8x32xf32>
    %13 = arith.mulf %10, %12 : vector<8x32xf32>
    %14 = arith.truncf %13 : vector<8x32xf32> to vector<8x32xbf16>
    %c0_5 = arith.constant 0 : index
    %c0_6 = arith.constant 0 : index
    %15 = vector.load %arg7[%c0_5, %c0_6] : memref<32x112xbf16, #tpu.memory_space<vmem>>, vector<32x112xbf16>
    %cst_7 = arith.constant dense<0.000000e+00> : vector<8x112xf32>
    %16 = tpu.matmul %14, %15, %cst_7 {dimension_numbers = #tpu.dot_dimension_numbers<[1], [0], [0], [1], [0, 0, 1, 1], [], []>} : vector<8x32xbf16>, vector<32x112xbf16>, vector<8x112xf32> -> vector<8x112xf32>
    %17 = vector.extract_strided_slice %16 {offsets = [0, 0], sizes = [8, 48], strides = [1, 1]} : vector<8x112xf32> to vector<8x48xf32>
    %c0_8 = arith.constant 0 : index
    %c0_9 = arith.constant 0 : index
    %18 = vector.load %arg3[%c0_8, %c0_9] : memref<8x48xf32, #tpu.memory_space<vmem>>, vector<8x48xf32>
    %19 = arith.mulf %17, %18 : vector<8x48xf32>
    %20 = vector.extract_strided_slice %16 {offsets = [0, 64], sizes = [8, 48], strides = [1, 1]} : vector<8x112xf32> to vector<8x48xf32>
    %c0_10 = arith.constant 0 : index
    %c0_11 = arith.constant 0 : index
    %21 = vector.load %arg4[%c0_10, %c0_11] : memref<8x48xf32, #tpu.memory_space<vmem>>, vector<8x48xf32>
    %22 = arith.mulf %20, %21 : vector<8x48xf32>
    %23 = arith.addf %19, %22 : vector<8x48xf32>
    %24 = vector.extract_strided_slice %16 {offsets = [0, 48], sizes = [8, 16], strides = [1, 1]} : vector<8x112xf32> to vector<8x16xf32>
    %c0_12 = arith.constant 0 : index
    %c0_13 = arith.constant 0 : index
    %25 = vector.load %arg2[%c0_12, %c0_13] : memref<16x8xf32, #tpu.memory_space<vmem>>, vector<16x8xf32>
    %26 = vector.extract_strided_slice %23 {offsets = [0, 0], sizes = [8, 8], strides = [1, 1]} : vector<8x48xf32> to vector<8x8xf32>
    %27 = vector.extract_strided_slice %23 {offsets = [0, 8], sizes = [8, 8], strides = [1, 1]} : vector<8x48xf32> to vector<8x8xf32>
    %28 = tpu.concatenate %26, %27 in 0 : vector<8x8xf32>, vector<8x8xf32> -> vector<16x8xf32>
    %29 = vector.extract_strided_slice %23 {offsets = [0, 32], sizes = [8, 8], strides = [1, 1]} : vector<8x48xf32> to vector<8x8xf32>
    %30 = vector.extract_strided_slice %24 {offsets = [0, 0], sizes = [8, 8], strides = [1, 1]} : vector<8x16xf32> to vector<8x8xf32>
    %31 = arith.truncf %28 : vector<16x8xf32> to vector<16x8xbf16>
    %32 = arith.truncf %29 : vector<8x8xf32> to vector<8x8xbf16>
    %cst_14 = arith.constant dense<0.000000e+00> : vector<16x8xf32>
    %33 = tpu.matmul %31, %32, %cst_14 {dimension_numbers = #tpu.dot_dimension_numbers<[1], [1], [0], [0], [0, 0, 1, 0], [], []>} : vector<16x8xbf16>, vector<8x8xbf16>, vector<16x8xf32> -> vector<16x8xf32>
    %34 = arith.addf %33, %25 : vector<16x8xf32>
    %cst_15 = arith.constant dense<0xFF800000> : vector<16xf32>
    %35 = vector.multi_reduction <maximumf>, %34, %cst_15 [1] : vector<16x8xf32> to vector<16xf32>
    %36 = vector.shape_cast %35 : vector<16xf32> to vector<16x1xf32>
    %37 = vector.broadcast %36 : vector<16x1xf32> to vector<16x8xf32>
    %38 = arith.subf %34, %37 : vector<16x8xf32>
    %39 = math.exp %38 : vector<16x8xf32>
    %cst_16 = arith.constant dense<0.000000e+00> : vector<16xf32>
    %40 = vector.multi_reduction <add>, %39, %cst_16 [1] : vector<16x8xf32> to vector<16xf32>
    %41 = vector.shape_cast %40 : vector<16xf32> to vector<16x1xf32>
    %42 = tpu.reciprocal %41 {approx = true} : vector<16x1xf32> -> vector<16x1xf32>
    %43 = vector.broadcast %42 : vector<16x1xf32> to vector<16x8xf32>
    %44 = arith.mulf %39, %43 : vector<16x8xf32>
    %45 = arith.truncf %44 : vector<16x8xf32> to vector<16x8xbf16>
    %46 = arith.truncf %30 : vector<8x8xf32> to vector<8x8xbf16>
    %cst_17 = arith.constant dense<0.000000e+00> : vector<16x8xf32>
    %47 = tpu.matmul %45, %46, %cst_17 {dimension_numbers = #tpu.dot_dimension_numbers<[1], [0], [0], [1], [0, 0, 1, 1], [], []>} : vector<16x8xbf16>, vector<8x8xbf16>, vector<16x8xf32> -> vector<16x8xf32>
    %48 = vector.extract_strided_slice %47 {offsets = [0, 0], sizes = [8, 8], strides = [1, 1]} : vector<16x8xf32> to vector<8x8xf32>
    %c0_18 = arith.constant 0 : index
    %c0_19 = arith.constant 0 : index
    %49 = vector.load %arg12[%c0_18, %c0_19] : memref<8x32xf32, #tpu.memory_space<vmem>>, vector<8x8xf32>
    tpu.vector_store %arg12[%c0_18, %c0_19], %48 {strides = array<i32>} : memref<8x32xf32, #tpu.memory_space<vmem>>, vector<8x8xf32>,
    %50 = vector.extract_strided_slice %47 {offsets = [8, 0], sizes = [8, 8], strides = [1, 1]} : vector<16x8xf32> to vector<8x8xf32>
    %c0_20 = arith.constant 0 : index
    %c8 = arith.constant 8 : index
    %51 = vector.load %arg12[%c0_20, %c8] : memref<8x32xf32, #tpu.memory_space<vmem>>, vector<8x8xf32>
    tpu.vector_store %arg12[%c0_20, %c8], %50 {strides = array<i32>} : memref<8x32xf32, #tpu.memory_space<vmem>>, vector<8x8xf32>,
    %52 = vector.extract_strided_slice %23 {offsets = [0, 16], sizes = [8, 8], strides = [1, 1]} : vector<8x48xf32> to vector<8x8xf32>
    %53 = vector.extract_strided_slice %23 {offsets = [0, 24], sizes = [8, 8], strides = [1, 1]} : vector<8x48xf32> to vector<8x8xf32>
    %54 = tpu.concatenate %52, %53 in 0 : vector<8x8xf32>, vector<8x8xf32> -> vector<16x8xf32>
    %55 = vector.extract_strided_slice %23 {offsets = [0, 40], sizes = [8, 8], strides = [1, 1]} : vector<8x48xf32> to vector<8x8xf32>
    %56 = vector.extract_strided_slice %24 {offsets = [0, 8], sizes = [8, 8], strides = [1, 1]} : vector<8x16xf32> to vector<8x8xf32>
    %57 = arith.truncf %54 : vector<16x8xf32> to vector<16x8xbf16>
    %58 = arith.truncf %55 : vector<8x8xf32> to vector<8x8xbf16>
    %cst_21 = arith.constant dense<0.000000e+00> : vector<16x8xf32>
    %59 = tpu.matmul %57, %58, %cst_21 {dimension_numbers = #tpu.dot_dimension_numbers<[1], [1], [0], [0], [0, 0, 1, 0], [], []>} : vector<16x8xbf16>, vector<8x8xbf16>, vector<16x8xf32> -> vector<16x8xf32>
    %60 = arith.addf %59, %25 : vector<16x8xf32>
    %cst_22 = arith.constant dense<0xFF800000> : vector<16xf32>
    %61 = vector.multi_reduction <maximumf>, %60, %cst_22 [1] : vector<16x8xf32> to vector<16xf32>
    %62 = vector.shape_cast %61 : vector<16xf32> to vector<16x1xf32>
    %63 = vector.broadcast %62 : vector<16x1xf32> to vector<16x8xf32>
    %64 = arith.subf %60, %63 : vector<16x8xf32>
    %65 = math.exp %64 : vector<16x8xf32>
    %cst_23 = arith.constant dense<0.000000e+00> : vector<16xf32>
    %66 = vector.multi_reduction <add>, %65, %cst_23 [1] : vector<16x8xf32> to vector<16xf32>
    %67 = vector.shape_cast %66 : vector<16xf32> to vector<16x1xf32>
    %68 = tpu.reciprocal %67 {approx = true} : vector<16x1xf32> -> vector<16x1xf32>
    %69 = vector.broadcast %68 : vector<16x1xf32> to vector<16x8xf32>
    %70 = arith.mulf %65, %69 : vector<16x8xf32>
    %71 = arith.truncf %70 : vector<16x8xf32> to vector<16x8xbf16>
    %72 = arith.truncf %56 : vector<8x8xf32> to vector<8x8xbf16>
    %cst_24 = arith.constant dense<0.000000e+00> : vector<16x8xf32>
    %73 = tpu.matmul %71, %72, %cst_24 {dimension_numbers = #tpu.dot_dimension_numbers<[1], [0], [0], [1], [0, 0, 1, 1], [], []>} : vector<16x8xbf16>, vector<8x8xbf16>, vector<16x8xf32> -> vector<16x8xf32>
    %74 = vector.extract_strided_slice %73 {offsets = [0, 0], sizes = [8, 8], strides = [1, 1]} : vector<16x8xf32> to vector<8x8xf32>
    %c0_25 = arith.constant 0 : index
    %c16 = arith.constant 16 : index
    %75 = vector.load %arg12[%c0_25, %c16] : memref<8x32xf32, #tpu.memory_space<vmem>>, vector<8x8xf32>
    tpu.vector_store %arg12[%c0_25, %c16], %74 {strides = array<i32>} : memref<8x32xf32, #tpu.memory_space<vmem>>, vector<8x8xf32>,
    %76 = vector.extract_strided_slice %73 {offsets = [8, 0], sizes = [8, 8], strides = [1, 1]} : vector<16x8xf32> to vector<8x8xf32>
    %c0_26 = arith.constant 0 : index
    %c24 = arith.constant 24 : index
    %77 = vector.load %arg12[%c0_26, %c24] : memref<8x32xf32, #tpu.memory_space<vmem>>, vector<8x8xf32>
    tpu.vector_store %arg12[%c0_26, %c24], %76 {strides = array<i32>} : memref<8x32xf32, #tpu.memory_space<vmem>>, vector<8x8xf32>,
    %c0_27 = arith.constant 0 : index
    %c0_28 = arith.constant 0 : index
    %78 = vector.load %arg12[%c0_27, %c0_28] : memref<8x32xf32, #tpu.memory_space<vmem>>, vector<8x32xf32>
    %79 = arith.truncf %78 : vector<8x32xf32> to vector<8x32xbf16>
    %c0_29 = arith.constant 0 : index
    %c0_30 = arith.constant 0 : index
    %80 = vector.load %arg8[%c0_29, %c0_30] : memref<32x32xbf16, #tpu.memory_space<vmem>>, vector<32x32xbf16>
    %cst_31 = arith.constant dense<0.000000e+00> : vector<8x32xf32>
    %81 = tpu.matmul %79, %80, %cst_31 {dimension_numbers = #tpu.dot_dimension_numbers<[1], [0], [0], [1], [0, 0, 1, 1], [], []>} : vector<8x32xbf16>, vector<32x32xbf16>, vector<8x32xf32> -> vector<8x32xf32>
    %82 = arith.addf %0, %81 : vector<8x32xf32>
    %83 = arith.mulf %82, %82 : vector<8x32xf32>
    %cst_32 = arith.constant dense<0.000000e+00> : vector<8xf32>
    %84 = vector.multi_reduction <add>, %83, %cst_32 [1] : vector<8x32xf32> to vector<8xf32>
    %85 = vector.shape_cast %84 : vector<8xf32> to vector<8x1xf32>
    %cst_33 = arith.constant 3.200000e+01 : f32
    %86 = vector.broadcast %cst_33 : f32 to vector<8x1xf32>
    %87 = arith.divf %85, %86 : vector<8x1xf32>
    %cst_34 = arith.constant 9.99999997E-7 : f32
    %88 = vector.broadcast %cst_34 : f32 to vector<8x1xf32>
    %89 = arith.addf %87, %88 : vector<8x1xf32>
    %90 = math.rsqrt %89 : vector<8x1xf32>
    %91 = vector.broadcast %90 : vector<8x1xf32> to vector<8x32xf32>
    %92 = arith.mulf %82, %91 : vector<8x32xf32>
    %c0_35 = arith.constant 0 : index
    %c0_36 = arith.constant 0 : index
    %93 = vector.load %arg6[%c0_35, %c0_36] : memref<1x32xf32, #tpu.memory_space<vmem>>, vector<1x32xf32>
    %94 = vector.broadcast %93 : vector<1x32xf32> to vector<8x32xf32>
    %95 = arith.mulf %92, %94 : vector<8x32xf32>
    %96 = arith.truncf %95 : vector<8x32xf32> to vector<8x32xbf16>
    %c0_37 = arith.constant 0 : index
    %c0_38 = arith.constant 0 : index
    %97 = vector.load %arg9[%c0_37, %c0_38] : memref<32x128xbf16, #tpu.memory_space<vmem>>, vector<32x128xbf16>
    %cst_39 = arith.constant dense<0.000000e+00> : vector<8x128xf32>
    %98 = tpu.matmul %96, %97, %cst_39 {dimension_numbers = #tpu.dot_dimension_numbers<[1], [0], [0], [1], [0, 0, 1, 1], [], []>} : vector<8x32xbf16>, vector<32x128xbf16>, vector<8x128xf32> -> vector<8x128xf32>
    %99 = vector.extract_strided_slice %98 {offsets = [0, 0], sizes = [8, 64], strides = [1, 1]} : vector<8x128xf32> to vector<8x64xf32>
    %100 = vector.extract_strided_slice %98 {offsets = [0, 64], sizes = [8, 64], strides = [1, 1]} : vector<8x128xf32> to vector<8x64xf32>
    %101 = arith.negf %99 : vector<8x64xf32>
    %102 = math.exp %101 : vector<8x64xf32>
    %cst_40 = arith.constant 1.000000e+00 : f32
    %103 = vector.broadcast %cst_40 : f32 to vector<8x64xf32>
    %104 = arith.addf %103, %102 : vector<8x64xf32>
    %105 = arith.divf %103, %104 : vector<8x64xf32>
    %106 = arith.mulf %99, %105 : vector<8x64xf32>
    %107 = arith.mulf %106, %100 : vector<8x64xf32>
    %108 = arith.truncf %107 : vector<8x64xf32> to vector<8x64xbf16>
    %c0_41 = arith.constant 0 : index
    %c0_42 = arith.constant 0 : index
    %109 = vector.load %arg10[%c0_41, %c0_42] : memref<64x32xbf16, #tpu.memory_space<vmem>>, vector<64x32xbf16>
    %cst_43 = arith.constant dense<0.000000e+00> : vector<8x32xf32>
    %110 = tpu.matmul %108, %109, %cst_43 {dimension_numbers = #tpu.dot_dimension_numbers<[1], [0], [0], [1], [0, 0, 1, 1], [], []>} : vector<8x64xbf16>, vector<64x32xbf16>, vector<8x32xf32> -> vector<8x32xf32>
    %111 = arith.addf %82, %110 : vector<8x32xf32>
    %c0_44 = arith.constant 0 : index
    %c0_45 = arith.constant 0 : index
    %112 = vector.load %arg11[%c0_44, %c0_45] : memref<8x32xf32, #tpu.memory_space<vmem>>, vector<8x32xf32>
    tpu.vector_store %arg11[%c0_44, %c0_45], %111 {strides = array<i32>} : memref<8x32xf32, #tpu.memory_space<vmem>>, vector<8x32xf32>,
    return
  }
  func.func @transform_0(%arg0: i32) -> (i32, i32) {
    %c0_i32 = arith.constant 0 : i32
    %c0_i32_0 = arith.constant 0 : i32
    return %arg0, %c0_i32 : i32, i32
  }
  func.func @transform_1(%arg0: i32) -> (i32, i32) {
    %c0_i32 = arith.constant 0 : i32
    %c0_i32_0 = arith.constant 0 : i32
    return %arg0, %c0_i32 : i32, i32
  }
  func.func @transform_2(%arg0: i32) -> (i32, i32) {
    %c0_i32 = arith.constant 0 : i32
    %c0_i32_0 = arith.constant 0 : i32
    %c0_i32_1 = arith.constant 0 : i32
    return %c0_i32, %c0_i32_0 : i32, i32
  }
  func.func @transform_3(%arg0: i32) -> (i32, i32) {
    %c0_i32 = arith.constant 0 : i32
    %c0_i32_0 = arith.constant 0 : i32
    %c0_i32_1 = arith.constant 0 : i32
    return %c0_i32, %c0_i32_0 : i32, i32
  }
  func.func @transform_4(%arg0: i32) -> (i32, i32) {
    %c0_i32 = arith.constant 0 : i32
    %c0_i32_0 = arith.constant 0 : i32
    %c0_i32_1 = arith.constant 0 : i32
    return %c0_i32, %c0_i32_0 : i32, i32
  }
  func.func @transform_5(%arg0: i32) -> (i32, i32) {
    %c0_i32 = arith.constant 0 : i32
    %c0_i32_0 = arith.constant 0 : i32
    %c0_i32_1 = arith.constant 0 : i32
    return %c0_i32, %c0_i32_0 : i32, i32
  }
  func.func @transform_6(%arg0: i32) -> (i32, i32) {
    %c0_i32 = arith.constant 0 : i32
    %c0_i32_0 = arith.constant 0 : i32
    %c0_i32_1 = arith.constant 0 : i32
    return %c0_i32, %c0_i32_0 : i32, i32
  }
  func.func @transform_7(%arg0: i32) -> (i32, i32) {
    %c0_i32 = arith.constant 0 : i32
    %c0_i32_0 = arith.constant 0 : i32
    %c0_i32_1 = arith.constant 0 : i32
    return %c0_i32, %c0_i32_0 : i32, i32
  }
  func.func @transform_8(%arg0: i32) -> (i32, i32) {
    %c0_i32 = arith.constant 0 : i32
    %c0_i32_0 = arith.constant 0 : i32
    %c0_i32_1 = arith.constant 0 : i32
    return %c0_i32, %c0_i32_0 : i32, i32
  }
  func.func @transform_9(%arg0: i32) -> (i32, i32) {
    %c0_i32 = arith.constant 0 : i32
    %c0_i32_0 = arith.constant 0 : i32
    %c0_i32_1 = arith.constant 0 : i32
    return %c0_i32, %c0_i32_0 : i32, i32
  }
  func.func @transform_10(%arg0: i32) -> (i32, i32) {
    %c0_i32 = arith.constant 0 : i32
    %c0_i32_0 = arith.constant 0 : i32
    return %arg0, %c0_i32 : i32, i32
  }
}

</mosaic_0001>

<bundles_post_ra>
// kernel: tpu_custom_call.1
= control target key start
LH: loop header
LB: loop body
LE: loop exit
PB: predicated region body
PF: predicated region fallthrough
CT: control target
= control target key end

     0   :  { %15 = vsyncpa [#allocation4], 0  ;;  %s1605_s0 = inlined_call_operand.vmem [shape: f32[16,32], index: 0, kind: input, shape index: {}]   ;;  %s1606_s1 = inlined_call_operand.vmem [shape: f32[32,8], index: 1, kind: input, shape index: {}]   ;;  %s1607_s2 = inlined_call_operand.vmem [shape: f32[8,48], index: 2, kind: input, shape index: {}]   ;;  %s1608_s3 = inlined_call_operand.vmem [shape: f32[8,48], index: 3, kind: input, shape index: {}]   ;;  %s1609_s4 = inlined_call_operand.vmem [shape: f32[1,32], index: 4, kind: input, shape index: {}]   ;;  %s1610_s5 = inlined_call_operand.vmem [shape: f32[1,32], index: 5, kind: input, shape index: {}]   ;;  %s1611_s6 = inlined_call_operand.vmem [shape: bf16[32,112], index: 6, kind: input, shape index: {}]   ;;  %s1612_s7 = inlined_call_operand.vmem [shape: bf16[32,32], index: 7, kind: input, shape index: {}]   ;;  %s1613_s8 = inlined_call_operand.vmem [shape: bf16[32,128], index: 8, kind: input, shape index: {}]   ;;  %s1614_s9 = inlined_call_operand.vmem [shape: bf16[64,32], index: 9, kind: input, shape index: {}]   ;;  %s1615_s10 = inlined_call_operand.hbm [shape: f32[16,32], index: 10, kind: output, shape index: {}]  }
   0x1   :  { %17 = vsyncpa [#allocation4 + $0x1], 0  ;;  %s1393_s13 = smov 0   ;;  %s1395_s14 = smov 0  }
   0x2   :  { %s1397_s15 = smov 0   ;;  %s1399_s16 = smov 0  }
   0x3 LB: > { %s1414_s17 = sadd.s32 4294967295, %s1323_s16   ;;  %s1061_s18 = sadd.s32 4294967294, %s1323_s16   ;;  %s1323_s16 = sphi %s1399_s16, %s1621_s16   ;;  %s1319_s15 = sphi %s1397_s15, %s1620_s15   ;;  %s1315_s14 = sphi %s1395_s14, %s1619_s14   ;;  %s1311_s13 = sphi %s1393_s13, %s1618_s13  }
   0x4   : > { %s1418_s19 = sadd.s32 1, %s1323_s16   ;;  %s250_s20 = sadd.s32 1, %s1319_s15 }
   0x5   : > { %s247_s21 = ssub.s32 %s1323_s16, %s1418_s19  ;;  %p260_p0 = scmp.ne.s32.totalorder %s1319_s15, %s1315_s14 }
   0x6   : > { %p248_p1 = scmp.eq.s32.totalorder %s247_s21, 0  ;;  %p261_p2 = scmp.eq.s32.totalorder %s1414_s17, 1 }
   0x7   : > { %p266_p3 = scmp.ne.s32.totalorder %s1315_s14, %s1311_s13  ;;  %p267_p4 = scmp.eq.s32.totalorder %s1061_s18, 1 }
   0x8   : > { %s1429_s22 = scalar_select %p248_p1, %s1319_s15, %s250_s20  }
   0x9   : > { %p1431_p5 = por %p261_p2, %p260_p0  ;;  %p1435_p6 = por %p267_p4, %p266_p3 }
   0xa   : > { %p1064_p7 = scmp.ge.s32.totalorder %s1323_s16, 1  ;;  %p325_p8 = scmp.lt.s32.totalorder %s1323_s16, 3 }
   0xc   : > { %p326_p9 = pnand %p1064_p7, %p325_p8 }
   0xd   : > { %p367_p10 = scmp.lt.s32.totalorder (!%p326_p9), %s1414_s17, 1  ;;  %vm380_vm0 = vcmask (!%p326_p9), 261120   ;;  %v1227_v3 = vld [vmem:[%s1611_s6] sm:$0xff] (!%p326_p9)   ;;  %v1325_v4 = vmov (!%p326_p9), 0.0   ;;  %vm1326_vm1 = vmmov (!%p326_p9), 0   ;;  %v1228_v5 = vld [vmem:[%s1611_s6 + $0x8] sm:$0xff] (!%p326_p9)  }
   0xe   : > { %329 = sbr.rel (%p326_p9) target bundleno = 2565 (0xa05), region = 60  ;;  %1116 = vmatprep.subr.bf16.mxu0 (!%p326_p9), %v1325_v4  ;;  %1120 = vmatprep.mubr.msk.bf16.mxu0 (!%p326_p9), %vm1326_vm1, %v1325_v4  ;;  %v459_v6 = vld [vmem:[%s1608_s3] sm:$0xff] (!%p326_p9)  ;;  %s1328_s30 = smov (!%p326_p9), 120   ;;  %vm481_vm2 = vcmask (!%p326_p9), 64512   ;;  %vm559_vm3 = vcmask (!%p326_p9), 1043456   ;;  %vm609_vm4 = vcmask (!%p326_p9), 130112  }
   0xf   : > { %1117 = vmatpush3.bf16.msra.mxu0 (!%p326_p9), %v1227_v3  ;;  %1124 = vmatprep.subr.bf16.mxu1 (!%p326_p9), %v1325_v4  ;;  %v1069_v11 = vld [vmem:[%s1609_s4] ss:$0 sm:$0xff] (!%p326_p9)  ;;  %s1329_s11 = smov (!%p326_p9), 96   ;;  %s1330_s12 = smov (!%p326_p9), 88   ;;  %vm739_vm5 = vcmask (!%p326_p9), 195712   ;;  %vm745_vm6 = vcmask (!%p326_p9), 261312  }
  0x10   : > { %1118 = vmatprep.subr.bf16.mxu0 (!%p326_p9), %v1325_v4  ;;  %1126 = vmatprep.mubr.msk.bf16.mxu1 (!%p326_p9), %vm1326_vm1, %v1325_v4  ;;  %v457_v21 = vld [vmem:[%s1607_s2] sm:$0xff] (!%p326_p9)  ;;  %s1331_s18 = smov (!%p326_p9), 112   ;;  %s1067_s20 = sshll.u32 (!%p326_p9), %s1414_s17, 1  ;;  %vm930_vm7 = vcmask (!%p326_p9), 523264  }
  0x11   : > { %p372_p11 = scmp.lt.s32.totalorder (!%p326_p9), %s1067_s20, 3  ;;  %s1336_s27 = smov (!%p326_p9), 24  }
  0x13   : > { %1119 = vmatpush3.bf16.msra.mxu0 (!%p326_p9), %v1228_v5 }
  0x14   : > { %1130 = vmatprep.subr.bf16.mxu0 (!%p326_p9), %v1325_v4 }
  0x15   : > { %s368_s25 = scalar_select %p367_p10, %s1414_s17, 1 }
  0x16   : > { %s1623_s20 = smov (!%p372_p11, %s1067_s20), 3 }
  0x17   : > { %s1066_s26 = sshll.u32 %s368_s25, 3  ;;  %s1327_s25 = smov 64  }
  0x18   : > { %s370_s29 = scalar_lea.vmem %s1605_s0, %s1066_s26  ;;  %s1068_s21 = sshll.u32 %s1623_s20, 3 }
  0x19   : > { %v1446_v0 = vld [vmem:[%s370_s29] sm:$0xff]  ;;  %s375_s28 = scalar_lea.vmem %s1606_s1, %s1068_s21  ;;  %s1332_s29 = smov 80  }
  0x1a   : > { %v379_v1 = vmul.f32 %v1446_v0, %v1446_v0  ;;  %v470_v33 = vld [vmem:[%s375_s28] sm:$0xff]  ;;  %v471_v35 = vld [vmem:[%s375_s28 + $0x8] sm:$0xff]  ;;  %s1334_s21 = smov 8   ;;  %s1335_s26 = smov 16  }
  0x1c   : > { %v381_v2 = vsel %vm380_vm0, %v379_v1, 0.0 }
  0x1d   : > { %382 = vadd.xlane.f32.xlu0 %v381_v2 }
  0x33   : > { %461 = vrot.lane.b32.xlu0 %v459_v6, %s1327_s25 }
  0xaa   : > { %v383_v7 = vpop.xlane.xlu0 %382 }
  0xab   : > { %v385_v8 = vmul.f32 0.03125, %v383_v7 }
  0xad   : > { %v386_v9 = vadd.f32 1e-06, %v385_v8 }
  0xae   : > { %v462_v15 = vpop.permute.xlu0 %461 }
  0xaf   : > { %1237 = vrsqrt.f32 %v386_v9 }
  0xb9   : > { %v1238_v10 = vpop.eup %1237 }
  0xba   : > { %v388_v12 = vmul.f32 %v1238_v10, %v1446_v0 }
  0xbc   : > { %v396_v13 = vmul.f32 %v1069_v11, %v388_v12 }
  0xbe   : > { %v397_v14 = vpack.c.bf16 %v396_v13, %v396_v13 }
  0xc0   : > { %1121 = vmatmul.mubr.msk.bf16.vlgmr.msra.gmra.mrb[0].mxu0 %vm380_vm0, %v397_v14 }
  0xc1   : > { %1132 = vmatprep.mubr.msk.bf16.mxu0 %vm1326_vm1, %v1325_v4 }
 0x193   : > { %v1476_v16 = vpop.f32.mrb[0].mxu0 }
 0x194   : > { %v464_v17 = vmul.f32 %v462_v15, %v1476_v16  ;;  %v1122_v18 = vpop.f32.mrb[1].mxu0  ;;  %v458_v22 = vmul.f32 %v457_v21, %v1476_v16  ;;  %v552_v9 = vpack.c.bf16 %v1476_v16, %v1476_v16 }
 0x195   : > { %v454_v19 = vpop.f32.mrb[2].mxu0 }
 0x196   : > { %v1123_v20 = vpop.f32.mrb[3].mxu0  ;;  %466 = vrot.lane.b32.xlu1 %v464_v17, %s1327_s25 }
 0x208   : > { %v467_v23 = vpop.permute.xlu1 %466 }
 0x209   : > { %v469_v24 = vadd.f32 %v467_v23, %v458_v22 }
 0x20b   : > { %473 = vrot.lane.b32.xlu1 %v469_v24, %s1328_s30  ;;  %v477_v25 = vpack.c.bf16 %v469_v24, %v469_v24  ;;  %s1333_s30 = smov 72  }
 0x20f   : > { %479 = vrot.lane.b32.xlu1 %v477_v25, %s1329_s11 }
 0x213   : > { %614 = vrot.lane.b32.xlu1 %v477_v25, %s1330_s12  ;;  %s364_s12 = sand.u32 1, %s1315_s14  }
 0x27d   : > { %v474_v26 = vpop.permute.xlu1 %473 }
 0x27e   : > { %v476_v27 = vpack.c.bf16 %v474_v26, %v469_v24 }
 0x280   : > { %612 = vrot.lane.b32.xlu1 %v476_v27, %s1331_s18  ;;  %s1091_s18 = sshll.u32 %s1414_s17, 7  ;;  %s977_s17 = scalar_lea.sflag [#allocation4], %s364_s12 }
 0x281   : > { %v480_v28 = vpop.permute.xlu1 %479  ;;  %s1562_s28 = scalar_lea.hbm %s1615_s10, %s1091_s18 }
 0x282   : > { %v486_v29 = vsel %vm481_vm2, %v480_v28, 0  ;;  %v1229_v28 = vld [vmem:[%s1612_s7] sm:$0xff]  }
 0x283   : > { %1125 = vmatpush3.bf16.xpose.msra.mxu1 %v486_v29 }
 0x284   : > { %1136 = vmatprep.subr.bf16.mxu1 %v1325_v4 }
 0x285   : > { %v615_v30 = vpop.permute.xlu1 %614 }
 0x286   : > { %v620_v31 = vsel %vm481_vm2, %v615_v30, 0 }
 0x28a   : > { %1127 = vmatmul.mubr.msk.bf16.vlgmr.msra.gmra.mrb[0].mxu1 %vm481_vm2, %v476_v27 }
 0x28b   : > { %1137 = vmatpush3.bf16.xpose.msra.mxu1 %v620_v31  ;;  %1138 = vmatprep.mubr.msk.bf16.mxu1 %vm1326_vm1, %v1325_v4  ;;  %v1230_v31 = vld [vmem:[%s1612_s7 + $0x8] sm:$0xff]  }
 0x28c   : > { %1148 = vmatprep.subr.bf16.mxu1 %v1325_v4 }
 0x2f2   : > { %v613_v32 = vpop.permute.xlu1 %612 }
 0x2f3   : > { %1139 = vmatmul.mubr.msk.bf16.vlgmr.msra.gmra.mrb[4].mxu1 %vm481_vm2, %v613_v32 }
 0x2f4   : > { %1152 = vmatprep.mubr.msk.bf16.mxu1 %vm1326_vm1, %v1325_v4  ;;  %1149 = vmatpush3.bf16.msra.mxu1 %v1229_v28 }
 0x2f5   : > { %1150 = vmatprep.subr.bf16.mxu1 %v1325_v4 }
 0x2f8   : > { %1151 = vmatpush3.bf16.msra.mxu1 %v1230_v31 }
 0x2f9   : > { %1164 = vmatprep.subr.bf16.mxu1 %v1325_v4 }
 0x35d   : > { %v522_v34 = vpop.f32.mrb[0].mxu1 }
 0x35e   : > { %v523_v36 = vadd.f32 %v522_v34, %v470_v33  ;;  %v1128_v37 = vpop.f32.mrb[1].mxu1 }
 0x35f   : > { %v525_v38 = vpop.f32.mrb[2].mxu1 }
 0x360   : > { %v526_v39 = vadd.f32 %v525_v38, %v471_v35  ;;  %v1129_v40 = vpop.f32.mrb[3].mxu1  ;;  %v529_v41 = vsel %vm481_vm2, %v523_v36, -inf }
 0x361   : > { %530 = vmax.xlane.f32.xlu1 %v529_v41 }
 0x362   : > { %v532_v42 = vsel %vm481_vm2, %v526_v39, -inf }
 0x363   : > { %533 = vmax.xlane.f32.xlu0 %v532_v42 }
 0x3c6   : > { %v656_v43 = vpop.f32.mrb[4].mxu1 }
 0x3c7   : > { %v657_v44 = vadd.f32 %v656_v43, %v470_v33  ;;  %v1140_v45 = vpop.f32.mrb[5].mxu1 }
 0x3c8   : > { %v659_v46 = vpop.f32.mrb[6].mxu1 }
 0x3c9   : > { %v660_v47 = vadd.f32 %v659_v46, %v471_v35  ;;  %v1141_v48 = vpop.f32.mrb[7].mxu1  ;;  %v663_v49 = vsel %vm481_vm2, %v657_v44, -inf }
 0x3ca   : > { %664 = vmax.xlane.f32.xlu1 %v663_v49 }
 0x3cb   : > { %v666_v50 = vsel %vm481_vm2, %v660_v47, -inf }
 0x3cc   : > { %667 = vmax.xlane.f32.xlu0 %v666_v50  ;;  %v1231_v50 = vld [vmem:[%s1613_s8] sm:$0xff]  }
 0x3ee   : > { %v531_v51 = vpop.xlane.xlu1 %530 }
 0x3ef   : > { %v535_v52 = vsub.f32 %v523_v36, %v531_v51  ;;  %v1232_v51 = vld [vmem:[%s1613_s8 + $0x8] sm:$0xff]  }
 0x3f0   : > { %v534_v53 = vpop.xlane.xlu0 %533 }
 0x3f1   : > { %v537_v54 = vmul.f32 1.442695, %v535_v52  ;;  %v536_v55 = vsub.f32 %v526_v39, %v534_v53 }
 0x3f3   : > { %1239 = vpow2.f32 %v537_v54  ;;  %v539_v56 = vmul.f32 1.442695, %v536_v55  ;;  %v1080_v55 = vld [vmem:[%s1610_s5] ss:$0 sm:$0xff] }
 0x3f5   : > { %1241 = vpow2.f32 %v539_v56 }
 0x3fd   : > { %v1240_v57 = vpop.eup %1239 }
 0x3fe   : > { %v541_v58 = vsel %vm481_vm2, %v1240_v57, 0.0 }
 0x3ff   : > { %v1242_v59 = vpop.eup %1241  ;;  %542 = vadd.xlane.f32.xlu1 %v541_v58 }
 0x400   : > { %v544_v60 = vsel %vm481_vm2, %v1242_v59, 0.0 }
 0x401   : > { %545 = vadd.xlane.f32.xlu0 %v544_v60  ;;  %v1234_v60 = vld [vmem:[%s1614_s9 + $0x8] sm:$0xff]  }
 0x457   : > { %v665_v61 = vpop.xlane.xlu1 %664 }
 0x458   : > { %v669_v62 = vsub.f32 %v657_v44, %v665_v61  ;;  %v1235_v61 = vld [vmem:[%s1614_s9 + $0x10] sm:$0xff]  }
 0x459   : > { %v668_v63 = vpop.xlane.xlu0 %667 }
 0x45a   : > { %v671_v1 = vmul.f32 1.442695, %v669_v62  ;;  %v670_v2 = vsub.f32 %v660_v47, %v668_v63  ;;  %v1236_v62 = vld [vmem:[%s1614_s9 + $0x18] sm:$0xff]  }
 0x45c   : > { %1243 = vpow2.f32 %v671_v1  ;;  %v673_v3 = vmul.f32 1.442695, %v670_v2 }
 0x45e   : > { %1245 = vpow2.f32 %v673_v3 }
 0x466   : > { %v1244_v5 = vpop.eup %1243 }
 0x467   : > { %v675_v6 = vsel %vm481_vm2, %v1244_v5, 0.0 }
 0x468   : > { %v1246_v7 = vpop.eup %1245  ;;  %676 = vadd.xlane.f32.xlu1 %v675_v6 }
 0x469   : > { %v678_v8 = vsel %vm481_vm2, %v1246_v7, 0.0 }
 0x46a   : > { %679 = vadd.xlane.f32.xlu0 %v678_v8 }
 0x479   : > { %554 = vrot.lane.b32.xlu1 %v552_v9, %s1332_s29 }
 0x480   : > { %686 = vrot.lane.b32.xlu0 %v552_v9, %s1333_s30  ;;  %s1337_s30 = smov [#allocation3]  }
 0x481   : > { %s1265_s11 = sshll.u32 %s1337_s30, 4  ;;  %s1266_s11 = int_to_ptr.vmem [resolvable:$false] %s1265_s11 }
 0x48c   : > { %v543_v11 = vpop.xlane.xlu1 %542 }
 0x48e   : > { %v546_v10 = vpop.xlane.xlu0 %545 }
 0x48f   : > { %1247 = vrcp.f32 %v546_v10 }
 0x490   : > { %1249 = vrcp.f32 %v543_v11 }
 0x499   : > { %v1248_v12 = vpop.eup %1247 }
 0x49a   : > { %v1250_v14 = vpop.eup %1249  ;;  %v550_v17 = vmul.f32 %v1248_v12, %v1242_v59  ;;  %v1233_v59 = vld [vmem:[%s1614_s9] sm:$0xff]  }
 0x49b   : > { %v549_v19 = vmul.f32 %v1250_v14, %v1240_v57 }
 0x49d   : > { %v551_v21 = vpack.c.bf16 %v550_v17, %v549_v19 }
 0x4f5   : > { %v677_v13 = vpop.xlane.xlu1 %676 }
 0x4f6   : > { %1251 = vrcp.f32 %v677_v13 }
 0x4f7   : > { %v680_v15 = vpop.xlane.xlu0 %679 }
 0x4f8   : > { %1253 = vrcp.f32 %v680_v15 }
 0x4f9   : > { %v555_v18 = vpop.permute.xlu1 %554 }
 0x4fa   : > { %v561_v20 = vsel %vm559_vm3, %v555_v18, 0 }
 0x4fb   : > { %v687_v16 = vpop.permute.xlu0 %686  ;;  %1131 = vmatpush3.bf16.msra.mxu0 %v561_v20 }
 0x4fc   : > { %1142 = vmatprep.subr.bf16.mxu0 %v1325_v4  ;;  %v692_v22 = vsel %vm559_vm3, %v687_v16, 0 }
 0x4fe   : > { %1133 = vmatmul.mubr.msk.bf16.vlgmr.msra.gmra.mrb[4].mxu0 %vm481_vm2, %v551_v21 }
 0x4ff   : > { %1143 = vmatpush3.bf16.msra.mxu0 %v692_v22  ;;  %1144 = vmatprep.mubr.msk.bf16.mxu0 %vm1326_vm1, %v1325_v4 }
 0x500   : > { %v1252_v23 = vpop.eup %1251  ;;  %1156 = vmatprep.subr.bf16.mxu0 %v1325_v4 }
 0x501   : > { %v683_v25 = vmul.f32 %v1252_v23, %v1244_v5 }
 0x502   : > { %v1254_v24 = vpop.eup %1253 }
 0x503   : > { %v684_v26 = vmul.f32 %v1254_v24, %v1246_v7 }
 0x505   : > { %v685_v27 = vpack.c.bf16 %v684_v26, %v683_v25 }
 0x507   : > { %1145 = vmatmul.mubr.msk.bf16.vlgmr.msra.gmra.mrb[8].mxu0 %vm481_vm2, %v685_v27 }
 0x508   : > { %1160 = vmatprep.mubr.msk.bf16.mxu0 %vm1326_vm1, %v1325_v4  ;;  %1157 = vmatpush3.bf16.msra.mxu0 %v1231_v50 }
 0x509   : > { %1158 = vmatprep.subr.bf16.mxu0 %v1325_v4 }
 0x50c   : > { %1159 = vmatpush3.bf16.msra.mxu0 %v1232_v51 }
 0x5d1   : > { %v597_v29 = vpop.f32.mrb[4].mxu0 }
 0x5d2   : > { %604 = vst.msk [vmem:[#allocation2] sm:$0xff] %vm481_vm2, %v597_v29  ;;  %v1134_v30 = vpop.f32.mrb[5].mxu0 }
 0x5d3   : > { %v600_v32 = vpop.f32.mrb[6].mxu0 }
 0x5d4   : > { %606 = vrot.lane.b32.xlu1 %v600_v32, %s1334_s21  ;;  %v1135_v33 = vpop.f32.mrb[7].mxu0 }
 0x5da   : > { %v728_v34 = vpop.f32.mrb[8].mxu0 }
 0x5db   : > { %736 = vrot.lane.b32.xlu1 %v728_v34, %s1335_s26  ;;  %v1146_v35 = vpop.f32.mrb[9].mxu0 }
 0x5dc   : > { %v731_v36 = vpop.f32.mrb[10].mxu0 }
 0x5dd   : > { %742 = vrot.lane.b32.xlu0 %v731_v36, %s1336_s27  ;;  %v1147_v37 = vpop.f32.mrb[11].mxu0 }
 0x646   : > { %v607_v38 = vpop.permute.xlu1 %606 }
 0x647   : > { %610 = vst.msk [vmem:[#allocation2] sm:$0xff] %vm609_vm4, %v607_v38 }
 0x64d   : > { %v737_v39 = vpop.permute.xlu1 %736 }
 0x64e   : > { %740 = vst.msk [vmem:[#allocation2] sm:$0xff] %vm739_vm5, %v737_v39 }
 0x64f   : > { %v743_v40 = vpop.permute.xlu0 %742 }
 0x650   : > { %746 = vst.msk [vmem:[#allocation2] sm:$0xff] %vm745_vm6, %v743_v40 }
 0x657   : > { %v747_v41 = vld [vmem:[#allocation2] sm:$0xff] }
 0x658   : > { %v748_v42 = vpack.c.bf16 %v747_v41, %v747_v41 }
 0x65a   : > { %1153 = vmatmul.mubr.msk.bf16.vlgmr.msra.gmra.mrb[8].mxu1 %vm380_vm0, %v748_v42 }
 0x65b   : > { %1172 = vmatprep.mubr.msk.bf16.mxu1 %vm1326_vm1, %v1325_v4  ;;  %1165 = vmatpush3.bf16.msra.mxu1 %v1233_v59 }
 0x65c   : > { %1166 = vmatprep.subr.bf16.mxu1 %v1325_v4 }
 0x65f   : > { %1167 = vmatpush3.bf16.msra.mxu1 %v1234_v60 }
 0x660   : > { %1168 = vmatprep.subr.bf16.mxu1 %v1325_v4 }
 0x663   : > { %1169 = vmatpush3.bf16.msra.mxu1 %v1235_v61 }
 0x664   : > { %1170 = vmatprep.subr.bf16.mxu1 %v1325_v4 }
 0x667   : > { %1171 = vmatpush3.bf16.msra.mxu1 %v1236_v62 }
 0x72d   : > { %v802_v43 = vpop.f32.mrb[8].mxu1 }
 0x72e   : > { %v808_v44 = vadd.f32 %v802_v43, %v1446_v0  ;;  %v1154_v45 = vpop.f32.mrb[9].mxu1 }
 0x72f   : > { %v805_v46 = vpop.f32.mrb[10].mxu1 }
 0x730   : > { %v1155_v47 = vpop.f32.mrb[11].mxu1  ;;  %v809_v48 = vmul.f32 %v808_v44, %v808_v44 }
 0x732   : > { %v810_v49 = vsel %vm380_vm0, %v809_v48, 0.0 }
 0x733   : > { %811 = vadd.xlane.f32.xlu1 %v810_v49 }
 0x7c0   : > { %v812_v0 = vpop.xlane.xlu1 %811 }
 0x7c1   : > { %v813_v52 = vmul.f32 0.03125, %v812_v0 }
 0x7c3   : > { %v814_v53 = vadd.f32 1e-06, %v813_v52 }
 0x7c5   : > { %1255 = vrsqrt.f32 %v814_v53 }
 0x7cf   : > { %v1256_v54 = vpop.eup %1255 }
 0x7d0   : > { %v816_v56 = vmul.f32 %v1256_v54, %v808_v44 }
 0x7d2   : > { %v824_v57 = vmul.f32 %v1080_v55, %v816_v56 }
 0x7d4   : > { %v825_v58 = vpack.c.bf16 %v824_v57, %v824_v57 }
 0x7d6   : > { %1161 = vmatmul.mubr.msk.bf16.vlgmr.msra.gmra.mrb[12].mxu0 %vm380_vm0, %v825_v58 }
 0x8a9   : > { %v879_v63 = vpop.f32.mrb[12].mxu0 }
 0x8aa   : > { %893 = vrot.lane.b32.xlu0 %v879_v63, %s1327_s25  ;;  %v1162_v1 = vpop.f32.mrb[13].mxu0  ;;  %v1084_v5 = vmul.f32 -1.442695, %v879_v63  ;;  %s1065_s25 = sshll.u32 %s364_s12, 3 }
 0x8ab   : > { %v882_v2 = vpop.f32.mrb[14].mxu0  ;;  %s366_s20 = scalar_lea.vmem [#allocation3], %s1065_s25  ;;  %s1267_s25 = scalar_lea.vmem %s1266_s11, 256 }
 0x8ac   : > { %v1163_v3 = vpop.f32.mrb[15].mxu0  ;;  %1257 = vpow2.f32 %v1084_v5  ;;  %s990_s21 = sshll.u32 %s366_s20, 4  ;;  %s1564_s21 = int_to_ptr.vmem [resolvable:$true] %s990_s21 }
 0x8ad   : > { %s1261_s29 = scalar_lea.vmem %s1564_s21, 128  ;;  %p1268_p1 = scmp.lt.s32.totalorder %s1564_s21, %s1266_s11 }
 0x8ae   : > { %p1262_p12 = scmp.ne.s32.totalorder %s1564_s21, %s1261_s29  ;;  %p1269_p2 = scmp.lt.s32.totalorder %s1267_s25, %s1261_s29 }
 0x8b0   : > { %p1263_p13 = pnand %p1262_p12, %p1431_p5  ;;  %p1270_p3 = por %p1269_p2, %p1268_p1 }
 0x8b2   : > { %p1264_p0 = pneg %p1263_p13 }
 0x8b4   : > { %p1271_p4 = pnand %p1270_p3, %p1264_p0 }
 0x8b6   : > { %v1258_v6 = vpop.eup %1257 }
 0x8b7   : > { %v888_v7 = vadd.f32 1.0, %v1258_v6 }
 0x8b9   : > { %1259 = vrcp.f32 %v888_v7 }
 0x8c3   : > { %v1260_v8 = vpop.eup %1259 }
 0x8c4   : > { %v891_v4 = vmul.f32 %v1260_v8, %v879_v63 }
 0x91c   : > { %v894_v9 = vpop.permute.xlu0 %893 }
 0x91d   : > { %v896_v10 = vmul.f32 %v894_v9, %v891_v4 }
 0x91f   : > { %v897_v11 = vpack.c.bf16 %v896_v10, %v896_v10 }
 0x921   : > { %1173 = vmatmul.mubr.msk.bf16.vlgmr.msra.gmra.mrb[12].mxu1 %vm930_vm7, %v897_v11 }
 0x9f4   : > { %v968_v12 = vpop.f32.mrb[12].mxu1 }
 0x9f5   : > { %v974_v13 = vadd.f32 %v968_v12, %v808_v44  ;;  %v1174_v14 = vpop.f32.mrb[13].mxu1 }
 0x9f6   : > { %v971_v15 = vpop.f32.mrb[14].mxu1 }
 0x9f7   : > { %v1175_v17 = vpop.f32.mrb[15].mxu1  ;;  %975 = vst.msk [vmem:[%s366_s20] sm:$0xff] %vm380_vm0, %v974_v13 }
 0x9f8   : > { %1274 = shalt.err (!%p1271_p4)
}
 0x9f9   : > { %s1275_s12 = scalar_lea.hbm %s1562_s28, 128  ;;  %s1279_s26 = scalar_lea.hbm %s1615_s10, 256 }
 0x9fa   : > { %p1276_p7 = scmp.ne.s32.totalorder %s1562_s28, %s1275_s12  ;;  %p1280_p10 = scmp.lt.u32.totalorder %s1562_s28, %s1615_s10 }
 0x9fb   : > { %p1281_p11 = scmp.lt.u32.totalorder %s1279_s26, %s1275_s12  ;;  %p1283_p13 = scmp.lt.u32.totalorder %s1275_s12, %s1562_s28 }
 0x9fc   : > { %p1277_p8 = pnand %p1276_p7, %p1431_p5 }
 0x9fd   : > { %p1282_p12 = por %p1281_p11, %p1280_p10 }
 0x9fe   : > { %p1278_p9 = pneg %p1277_p8 }
 0x9ff   : > { %p1284_p0 = por %p1283_p13, %p1282_p12 }
 0xa01   : > { %p1285_p1 = pnand %p1284_p0, %p1278_p9 }
 0xa03   : > { %1288 = shalt.err (!%p1285_p1)
}
 0xa04   : > { %1176 = dma.vmem_to_hbm [thread:$0]  (%p1431_p5), %s1564_s21, 128, %s1562_s28, %s977_s17  }
 0xa05 PF: > { %p1182_p2 = scmp.ge.s32.totalorder %s1323_s16, 2  ;;  %s1002_s29 = sand.u32 1, %s1311_s13  }
 0xa06   : > { %s1003_s11 = scalar_lea.sflag [#allocation4], %s1002_s29 }
 0xa07   : > { %p1179_p3 = pnand %p1182_p2, %p1435_p6 }
 0xa09   : > { %1306 = dma.done.wait (!%p1179_p3), %s1003_s11, 128  }
 0xa0a   : > { %1308 = vsyncadd (!%p1179_p3), %s1003_s11, 4294967168  ;;  %p20_p4 = scmp.ge.s32.totalorder %s1418_s19, 4   ;;  %s1618_s13 = smov %s1315_s14 }
 0xa0b   : > { %s1619_s14 = smov %s1319_s15  ;;  %s1620_s15 = smov %s1429_s22 }
 0xa0c   : > { %s1621_s16 = smov %s1418_s19  ;;  %22 = sbr.rel (!%p20_p4) target bundleno = 3 (0x3), region = 98 }
 0xa13   :  { %1008 = vsyncpa [#allocation4], 1 }
 0xa14   :  { %1010 = vsyncpa [#allocation4 + $0x1], 1 }

</bundles_post_ra>
